<compile_context>
chip_gen: v7x
topology: tpu7x:2x2x1
jax: 0.10.0
libtpu: 0.0.40
codegen_flags: <defaults>
</compile_context>

<pallas_src>
import jax
import jax.numpy as jnp
from jax.experimental import pallas as pl
from jax.experimental.pallas import tpu as pltpu


def deepfm_kernel(
    dense_ref,          # (TB, ND)        f32 or bf16
    sparse_ref,         # (TB, F*D)       f32 or bf16
    w1_ref, b1_ref,     # (ND, H) f32/bf16 ; (1, H)  f32
    w2_ref, b2_ref,     # (H, D)  f32/bf16 ; (1, D)  f32
    wfm_ref, bfm_ref,   # (FM_IN, DI) f32/bf16 ; (1, DI) f32
    wo_row_ref,         # (1, D+DI)  f32   -- [wo_e ; wo_di] as a row vector
    scal_ref,           # SMEM (2,)  f32   -- [wo_fm, bo]
    out_ref,            # (TB, 1)    f32
):
    x = dense_ref[...]
    s = sparse_ref[...]

    # ---- DenseArch: Linear -> ReLU -> Linear -> ReLU (f32 accumulation on MXU)
    h = jnp.maximum(
        jnp.dot(x.astype(w1_ref.dtype), w1_ref[...],
                preferred_element_type=jnp.float32) + b1_ref[...], 0.0)
    e = jnp.maximum(
        jnp.dot(h.astype(w2_ref.dtype), w2_ref[...],
                preferred_element_type=jnp.float32) + b2_ref[...], 0.0)

    # ---- fm_input = concat([e, s], 1), formed once (only (F+1)*D lanes wide, f32)
    fm_in = jnp.concatenate([e, s.astype(jnp.float32)], axis=1)      # (TB, FM_IN)

    # ---- DeepFM deep interaction: one MXU matmul on the unsplit weight
    di = jnp.maximum(
        jnp.dot(fm_in.astype(wfm_ref.dtype), wfm_ref[...],
                preferred_element_type=jnp.float32) + bfm_ref[...], 0.0)

    # ---- FactorizationMachine cross term (kept in f32: cancellation sensitive)
    s1 = jnp.sum(fm_in, axis=1, keepdims=True)
    s2 = jnp.sum(fm_in * fm_in, axis=1, keepdims=True)
    fm = 0.5 * (s1 * s1 - s2)                                        # (TB, 1)

    # ---- OverArch: N=1 projection on VPU (broadcast-mul) + XLU (lane reduce);
    #      scalar weight / bias come from SMEM.
    ed = jnp.concatenate([e, di], axis=1)                            # (TB, D+DI)
    logits = (jnp.sum(ed * wo_row_ref[...], axis=1, keepdims=True)
              + fm * scal_ref[0] + scal_ref[1])
    out_ref[...] = jax.nn.sigmoid(logits)


def simple_deepfm_forward(dense, sparse_pooled, params, *, tb=512, use_bf16=False):
    """dense: (B, ND) f32; sparse_pooled: (B, F*D) f32 (sum-pooled embeddings)."""
    B, ND = dense.shape
    FD = sparse_pooled.shape[1]
    H = params["w1"].shape[1]
    D = params["w2"].shape[1]
    FM_IN, DI = params["wfm"].shape
    assert FM_IN == D + FD

    # --- batch tiling: tile must be a multiple of 8 (sublane); pad batch to a
    #     whole number of tiles (padded rows are dropped after the call).
    tb = max(8, min(tb, ((B + 7) // 8) * 8))
    tb = (tb // 8) * 8
    Bp = ((B + tb - 1) // tb) * tb
    if Bp != B:
        pad = Bp - B
        dense = jnp.pad(dense, ((0, pad), (0, 0)))
        sparse_pooled = jnp.pad(sparse_pooled, ((0, pad), (0, 0)))
    grid = (Bp // tb,)

    # --- optionally halve HBM bytes for the big per-row activations + weights.
    mm_dtype = jnp.bfloat16 if use_bf16 else jnp.float32
    dense_in = dense.astype(mm_dtype)
    sparse_in = sparse_pooled.astype(mm_dtype)
    w1 = params["w1"].astype(mm_dtype)
    w2 = params["w2"].astype(mm_dtype)
    wfm = params["wfm"].astype(mm_dtype)
    b1, b2, bfm = params["b1"], params["b2"], params["bfm"]

    # OverArch weight: row vector for the VPU/XLU projection + SMEM scalars.
    wo_row = params["wo"][: D + DI].reshape(1, D + DI).astype(jnp.float32)
    scal = jnp.stack([params["wo"][D + DI, 0],
                      params["bo"].reshape(())]).astype(jnp.float32)   # [wo_fm, bo]

    def resident(a):  # constant block index -> fetched once, stays VMEM-resident
        return pl.BlockSpec(a.shape, lambda i: (0, 0))

    itemsize = jnp.dtype(mm_dtype).itemsize
    flops = 2 * Bp * (ND * H + H * D + FM_IN * DI + (D + DI) + 2 * FM_IN)
    bytes_accessed = (Bp * (ND + FD) * itemsize + Bp * 4
                      + (ND * H + H * D + FM_IN * DI) * itemsize
                      + (H + D + DI + (D + DI) + 2) * 4)

    out = pl.pallas_call(
        deepfm_kernel,
        out_shape=jax.ShapeDtypeStruct((Bp, 1), jnp.float32),
        grid=grid,
        in_specs=[
            pl.BlockSpec((tb, ND), lambda i: (i, 0)),     # dense   (batch-tiled)
            pl.BlockSpec((tb, FD), lambda i: (i, 0)),     # sparse  (batch-tiled)
            resident(w1), resident(b1),
            resident(w2), resident(b2),
            resident(wfm), resident(bfm),
            resident(wo_row),
            pl.BlockSpec(memory_space=pltpu.MemorySpace.SMEM),   # [wo_fm, bo]
        ],
        out_specs=pl.BlockSpec((tb, 1), lambda i: (i, 0)),
        compiler_params=pltpu.CompilerParams(
            dimension_semantics=("parallel",)),
        cost_estimate=pl.CostEstimate(
            flops=int(flops), transcendentals=int(Bp),
            bytes_accessed=int(bytes_accessed)),
    )(dense_in, sparse_in, w1, b1, w2, b2, wfm, bfm, wo_row, scal)
    return out[:B]


def reference_forward(dense, sparse_pooled, params):
    h = jax.nn.relu(dense @ params["w1"] + params["b1"])
    e = jax.nn.relu(h @ params["w2"] + params["b2"])
    fm_input = jnp.concatenate([e, sparse_pooled], axis=1)
    di = jax.nn.relu(fm_input @ params["wfm"] + params["bfm"])
    s1 = jnp.sum(fm_input, axis=1, keepdims=True)
    s2 = jnp.sum(fm_input * fm_input, axis=1, keepdims=True)
    fm = 0.5 * (s1 * s1 - s2)
    over_in = jnp.concatenate([e, di, fm], axis=1)
    return jax.nn.sigmoid(over_in @ params["wo"] + params["bo"])


def _make_inputs(key, B, ND, D, F, NUM_EMB):
    keys = jax.random.split(key, 4)
    dense = jax.random.normal(keys[0], (B, ND), dtype=jnp.float32)
    # Embedding tables + fixed 2-indices-per-bag sparse features.
    t1 = jax.random.normal(keys[1], (NUM_EMB, D), dtype=jnp.float32) * 0.1
    t2 = jax.random.normal(keys[2], (NUM_EMB, D), dtype=jnp.float32) * 0.1
    idx = jax.random.randint(keys[3], (F, B, 2), 0, NUM_EMB)
    # SparseArch glue (EmbeddingBag SUM pooling), key order [f1, f3, f2]
    pooled_f1 = jnp.sum(t1[idx[0]], axis=1)
    pooled_f3 = jnp.sum(t1[idx[1]], axis=1)
    pooled_f2 = jnp.sum(t2[idx[2]], axis=1)
    sparse_pooled = jnp.concatenate([pooled_f1, pooled_f3, pooled_f2], axis=1)
    return dense, sparse_pooled


if __name__ == "__main__":
    # Module-consistent small shapes:
    B = 8                 # batch
    ND = 16               # num_dense_features
    H = 32                # hidden_layer_size
    D = 8                 # embedding_dim (same for all tables)
    DI = 16               # deep_fm_dimension
    NUM_EMB = 100         # num_embeddings per table
    F = 3                 # features: t1 -> [f1, f3], t2 -> [f2]
    FM_IN = (F + 1) * D   # fm_in_features = D + F*D

    key = jax.random.PRNGKey(0)
    k_in, k_in2, k1, k2, k3, k4 = jax.random.split(key, 6)

    def lin_init(k, fan_in, fan_out):
        # deterministic uniform(-1/sqrt(fan_in), 1/sqrt(fan_in)) like nn.Linear
        kw, kb = jax.random.split(k)
        lim = 1.0 / jnp.sqrt(jnp.float32(fan_in))
        w = jax.random.uniform(kw, (fan_in, fan_out), jnp.float32, -lim, lim)
        b = jax.random.uniform(kb, (1, fan_out), jnp.float32, -lim, lim)
        return w, b

    w1, b1 = lin_init(k1, ND, H)
    w2, b2 = lin_init(k2, H, D)
    wfm, bfm = lin_init(k3, FM_IN, DI)
    wo, bo = lin_init(k4, D + DI + 1, 1)
    params = dict(w1=w1, b1=b1, w2=w2, b2=b2, wfm=wfm, bfm=bfm, wo=wo, bo=bo)

    # --- 1) small-batch f32 check (single grid step)
    dense, sparse_pooled = _make_inputs(k_in, B, ND, D, F, NUM_EMB)
    out = jax.block_until_ready(simple_deepfm_forward(dense, sparse_pooled, params))
    ref = reference_forward(dense, sparse_pooled, params)
    assert out.shape == (B, 1)
    assert jnp.allclose(out, ref, atol=1e-5, rtol=1e-5), (out, ref)

    # --- 2) multi-tile grid + batch padding path (B not a multiple of the tile)
    B2 = 300
    dense2, sparse2 = _make_inputs(k_in2, B2, ND, D, F, NUM_EMB)
    out2 = jax.block_until_ready(
        simple_deepfm_forward(dense2, sparse2, params, tb=128))
    ref2 = reference_forward(dense2, sparse2, params)
    assert out2.shape == (B2, 1)
    assert jnp.allclose(out2, ref2, atol=1e-4, rtol=1e-4)

    # --- 3) bf16 matmul-input path (f32 accumulation, f32 FM cross term)
    out3 = jax.block_until_ready(
        simple_deepfm_forward(dense2, sparse2, params, tb=128, use_bf16=True))
    assert out3.shape == (B2, 1)
    assert jnp.allclose(out3, ref2, atol=5e-2)

    print("KERNEL_OK")
</pallas_src>

<mosaic_0001>
module attributes {stable_mosaic.version = 11 : i64} {
  func.func @deepfm_kernel(%arg0: i32, %arg1: memref<8x16xf32, #tpu.memory_space<vmem>>, %arg2: memref<8x24xf32, #tpu.memory_space<vmem>>, %arg3: memref<16x32xf32, #tpu.memory_space<vmem>>, %arg4: memref<1x32xf32, #tpu.memory_space<vmem>>, %arg5: memref<32x8xf32, #tpu.memory_space<vmem>>, %arg6: memref<1x8xf32, #tpu.memory_space<vmem>>, %arg7: memref<32x16xf32, #tpu.memory_space<vmem>>, %arg8: memref<1x16xf32, #tpu.memory_space<vmem>>, %arg9: memref<1x24xf32, #tpu.memory_space<vmem>>, %arg10: memref<2xf32, #tpu.memory_space<smem>>, %arg11: memref<8x1xf32, #tpu.memory_space<vmem>>) attributes {dimension_semantics = [#tpu.dimension_semantics<parallel>], iteration_bounds = array<i64: 1>, scalar_prefetch = 0 : i64, scratch_operands = 0 : i64, tpu.core_type = #tpu.core_type<tc>, window_params = [{transform_indices = @transform_0, window_bounds = array<i64: 8, 16>}, {transform_indices = @transform_1, window_bounds = array<i64: 8, 24>}, {pipeline_mode = #tpu.pipeline_mode<synchronous>, transform_indices = @transform_2, window_bounds = array<i64: 16, 32>}, {pipeline_mode = #tpu.pipeline_mode<synchronous>, transform_indices = @transform_3, window_bounds = array<i64: 1, 32>}, {pipeline_mode = #tpu.pipeline_mode<synchronous>, transform_indices = @transform_4, window_bounds = array<i64: 32, 8>}, {pipeline_mode = #tpu.pipeline_mode<synchronous>, transform_indices = @transform_5, window_bounds = array<i64: 1, 8>}, {pipeline_mode = #tpu.pipeline_mode<synchronous>, transform_indices = @transform_6, window_bounds = array<i64: 32, 16>}, {pipeline_mode = #tpu.pipeline_mode<synchronous>, transform_indices = @transform_7, window_bounds = array<i64: 1, 16>}, {pipeline_mode = #tpu.pipeline_mode<synchronous>, transform_indices = @transform_8, window_bounds = array<i64: 1, 24>}, {transform_indices = @transform_9, window_bounds = array<i64: 2>}, {transform_indices = @transform_10, window_bounds = array<i64: 8, 1>}]} {
    %c0 = arith.constant 0 : index
    %c0_0 = arith.constant 0 : index
    %0 = vector.load %arg1[%c0, %c0_0] : memref<8x16xf32, #tpu.memory_space<vmem>>, vector<8x16xf32>
    %c0_1 = arith.constant 0 : index
    %c0_2 = arith.constant 0 : index
    %1 = vector.load %arg2[%c0_1, %c0_2] : memref<8x24xf32, #tpu.memory_space<vmem>>, vector<8x24xf32>
    %c0_3 = arith.constant 0 : index
    %c0_4 = arith.constant 0 : index
    %2 = vector.load %arg3[%c0_3, %c0_4] : memref<16x32xf32, #tpu.memory_space<vmem>>, vector<16x32xf32>
    %cst = arith.constant dense<0.000000e+00> : vector<8x32xf32>
    %3 = tpu.matmul %0, %2, %cst {dimension_numbers = #tpu.dot_dimension_numbers<[1], [0], [0], [1], [0, 0, 1, 1], [], []>} : vector<8x16xf32>, vector<16x32xf32>, vector<8x32xf32> -> vector<8x32xf32>
    %c0_5 = arith.constant 0 : index
    %c0_6 = arith.constant 0 : index
    %4 = vector.load %arg4[%c0_5, %c0_6] : memref<1x32xf32, #tpu.memory_space<vmem>>, vector<1x32xf32>
    %5 = vector.broadcast %4 : vector<1x32xf32> to vector<8x32xf32>
    %6 = arith.addf %3, %5 : vector<8x32xf32>
    %cst_7 = arith.constant 0.000000e+00 : f32
    %7 = vector.broadcast %cst_7 : f32 to vector<8x32xf32>
    %8 = arith.maximumf %6, %7 : vector<8x32xf32>
    %c0_8 = arith.constant 0 : index
    %c0_9 = arith.constant 0 : index
    %9 = vector.load %arg5[%c0_8, %c0_9] : memref<32x8xf32, #tpu.memory_space<vmem>>, vector<32x8xf32>
    %cst_10 = arith.constant dense<0.000000e+00> : vector<8x8xf32>
    %10 = tpu.matmul %8, %9, %cst_10 {dimension_numbers = #tpu.dot_dimension_numbers<[1], [0], [0], [1], [0, 0, 1, 1], [], []>} : vector<8x32xf32>, vector<32x8xf32>, vector<8x8xf32> -> vector<8x8xf32>
    %c0_11 = arith.constant 0 : index
    %c0_12 = arith.constant 0 : index
    %11 = vector.load %arg6[%c0_11, %c0_12] : memref<1x8xf32, #tpu.memory_space<vmem>>, vector<1x8xf32>
    %12 = vector.broadcast %11 : vector<1x8xf32> to vector<8x8xf32>
    %13 = arith.addf %10, %12 : vector<8x8xf32>
    %cst_13 = arith.constant 0.000000e+00 : f32
    %14 = vector.broadcast %cst_13 : f32 to vector<8x8xf32>
    %15 = arith.maximumf %13, %14 : vector<8x8xf32>
    %16 = tpu.concatenate %15, %1 in 1 : vector<8x8xf32>, vector<8x24xf32> -> vector<8x32xf32>
    %c0_14 = arith.constant 0 : index
    %c0_15 = arith.constant 0 : index
    %17 = vector.load %arg7[%c0_14, %c0_15] : memref<32x16xf32, #tpu.memory_space<vmem>>, vector<32x16xf32>
    %cst_16 = arith.constant dense<0.000000e+00> : vector<8x16xf32>
    %18 = tpu.matmul %16, %17, %cst_16 {dimension_numbers = #tpu.dot_dimension_numbers<[1], [0], [0], [1], [0, 0, 1, 1], [], []>} : vector<8x32xf32>, vector<32x16xf32>, vector<8x16xf32> -> vector<8x16xf32>
    %c0_17 = arith.constant 0 : index
    %c0_18 = arith.constant 0 : index
    %19 = vector.load %arg8[%c0_17, %c0_18] : memref<1x16xf32, #tpu.memory_space<vmem>>, vector<1x16xf32>
    %20 = vector.broadcast %19 : vector<1x16xf32> to vector<8x16xf32>
    %21 = arith.addf %18, %20 : vector<8x16xf32>
    %cst_19 = arith.constant 0.000000e+00 : f32
    %22 = vector.broadcast %cst_19 : f32 to vector<8x16xf32>
    %23 = arith.maximumf %21, %22 : vector<8x16xf32>
    %cst_20 = arith.constant dense<0.000000e+00> : vector<8xf32>
    %24 = vector.multi_reduction <add>, %16, %cst_20 [1] : vector<8x32xf32> to vector<8xf32>
    %25 = vector.shape_cast %24 : vector<8xf32> to vector<8x1xf32>
    %26 = arith.mulf %16, %16 : vector<8x32xf32>
    %cst_21 = arith.constant dense<0.000000e+00> : vector<8xf32>
    %27 = vector.multi_reduction <add>, %26, %cst_21 [1] : vector<8x32xf32> to vector<8xf32>
    %28 = vector.shape_cast %27 : vector<8xf32> to vector<8x1xf32>
    %29 = arith.mulf %25, %25 : vector<8x1xf32>
    %30 = arith.subf %29, %28 : vector<8x1xf32>
    %cst_22 = arith.constant 5.000000e-01 : f32
    %31 = vector.broadcast %cst_22 : f32 to vector<8x1xf32>
    %32 = arith.mulf %31, %30 : vector<8x1xf32>
    %33 = tpu.concatenate %15, %23 in 1 : vector<8x8xf32>, vector<8x16xf32> -> vector<8x24xf32>
    %c0_23 = arith.constant 0 : index
    %c0_24 = arith.constant 0 : index
    %34 = vector.load %arg9[%c0_23, %c0_24] : memref<1x24xf32, #tpu.memory_space<vmem>>, vector<1x24xf32>
    %35 = vector.broadcast %34 : vector<1x24xf32> to vector<8x24xf32>
    %36 = arith.mulf %33, %35 : vector<8x24xf32>
    %cst_25 = arith.constant dense<0.000000e+00> : vector<8xf32>
    %37 = vector.multi_reduction <add>, %36, %cst_25 [1] : vector<8x24xf32> to vector<8xf32>
    %38 = vector.shape_cast %37 : vector<8xf32> to vector<8x1xf32>
    %c0_26 = arith.constant 0 : index
    %39 = memref.load %arg10[%c0_26] : memref<2xf32, #tpu.memory_space<smem>>
    %40 = vector.broadcast %39 : f32 to vector<8x1xf32>
    %41 = arith.mulf %32, %40 : vector<8x1xf32>
    %42 = arith.addf %38, %41 : vector<8x1xf32>
    %c1 = arith.constant 1 : index
    %43 = memref.load %arg10[%c1] : memref<2xf32, #tpu.memory_space<smem>>
    %44 = vector.broadcast %43 : f32 to vector<8x1xf32>
    %45 = arith.addf %42, %44 : vector<8x1xf32>
    %46 = arith.negf %45 : vector<8x1xf32>
    %47 = math.exp %46 : vector<8x1xf32>
    %cst_27 = arith.constant 1.000000e+00 : f32
    %48 = vector.broadcast %cst_27 : f32 to vector<8x1xf32>
    %49 = arith.addf %48, %47 : vector<8x1xf32>
    %50 = arith.divf %48, %49 : vector<8x1xf32>
    %c0_28 = arith.constant 0 : index
    %c0_29 = arith.constant 0 : index
    %51 = vector.load %arg11[%c0_28, %c0_29] : memref<8x1xf32, #tpu.memory_space<vmem>>, vector<8x1xf32>
    tpu.vector_store %arg11[%c0_28, %c0_29], %50 {strides = array<i32>} : memref<8x1xf32, #tpu.memory_space<vmem>>, vector<8x1xf32>,
    return
  }
  func.func @transform_0(%arg0: i32) -> (i32, i32) {
    %c0_i32 = arith.constant 0 : i32
    %c0_i32_0 = arith.constant 0 : i32
    return %arg0, %c0_i32 : i32, i32
  }
  func.func @transform_1(%arg0: i32) -> (i32, i32) {
    %c0_i32 = arith.constant 0 : i32
    %c0_i32_0 = arith.constant 0 : i32
    return %arg0, %c0_i32 : i32, i32
  }
  func.func @transform_2(%arg0: i32) -> (i32, i32) {
    %c0_i32 = arith.constant 0 : i32
    %c0_i32_0 = arith.constant 0 : i32
    %c0_i32_1 = arith.constant 0 : i32
    return %c0_i32, %c0_i32_0 : i32, i32
  }
  func.func @transform_3(%arg0: i32) -> (i32, i32) {
    %c0_i32 = arith.constant 0 : i32
    %c0_i32_0 = arith.constant 0 : i32
    %c0_i32_1 = arith.constant 0 : i32
    return %c0_i32, %c0_i32_0 : i32, i32
  }
  func.func @transform_4(%arg0: i32) -> (i32, i32) {
    %c0_i32 = arith.constant 0 : i32
    %c0_i32_0 = arith.constant 0 : i32
    %c0_i32_1 = arith.constant 0 : i32
    return %c0_i32, %c0_i32_0 : i32, i32
  }
  func.func @transform_5(%arg0: i32) -> (i32, i32) {
    %c0_i32 = arith.constant 0 : i32
    %c0_i32_0 = arith.constant 0 : i32
    %c0_i32_1 = arith.constant 0 : i32
    return %c0_i32, %c0_i32_0 : i32, i32
  }
  func.func @transform_6(%arg0: i32) -> (i32, i32) {
    %c0_i32 = arith.constant 0 : i32
    %c0_i32_0 = arith.constant 0 : i32
    %c0_i32_1 = arith.constant 0 : i32
    return %c0_i32, %c0_i32_0 : i32, i32
  }
  func.func @transform_7(%arg0: i32) -> (i32, i32) {
    %c0_i32 = arith.constant 0 : i32
    %c0_i32_0 = arith.constant 0 : i32
    %c0_i32_1 = arith.constant 0 : i32
    return %c0_i32, %c0_i32_0 : i32, i32
  }
  func.func @transform_8(%arg0: i32) -> (i32, i32) {
    %c0_i32 = arith.constant 0 : i32
    %c0_i32_0 = arith.constant 0 : i32
    %c0_i32_1 = arith.constant 0 : i32
    return %c0_i32, %c0_i32_0 : i32, i32
  }
  func.func @transform_9(%arg0: i32) -> i32 {
    %c0_i32 = arith.constant 0 : i32
    %c0_i32_0 = arith.constant 0 : i32
    return %c0_i32 : i32
  }
  func.func @transform_10(%arg0: i32) -> (i32, i32) {
    %c0_i32 = arith.constant 0 : i32
    %c0_i32_0 = arith.constant 0 : i32
    return %arg0, %c0_i32 : i32, i32
  }
}

</mosaic_0001>

<bundles_post_ra>
// kernel: tpu_custom_call.1
= control target key start
LH: loop header
LB: loop body
LE: loop exit
PB: predicated region body
PF: predicated region fallthrough
CT: control target
= control target key end

     0   :  { %15 = vsyncpa [#allocation3], 0  ;;  %s569_s0 = inlined_call_operand.vmem [shape: f32[8,16], index: 0, kind: input, shape index: {}]   ;;  %s570_s1 = inlined_call_operand.vmem [shape: f32[8,24], index: 1, kind: input, shape index: {}]   ;;  %s571_s2 = inlined_call_operand.vmem [shape: f32[16,32], index: 2, kind: input, shape index: {}]   ;;  %s572_s3 = inlined_call_operand.vmem [shape: f32[1,32], index: 3, kind: input, shape index: {}]   ;;  %s573_s4 = inlined_call_operand.vmem [shape: f32[32,8], index: 4, kind: input, shape index: {}]   ;;  %s574_s5 = inlined_call_operand.vmem [shape: f32[1,8], index: 5, kind: input, shape index: {}]   ;;  %s575_s6 = inlined_call_operand.vmem [shape: f32[32,16], index: 6, kind: input, shape index: {}]   ;;  %s576_s7 = inlined_call_operand.vmem [shape: f32[1,16], index: 7, kind: input, shape index: {}]   ;;  %s577_s8 = inlined_call_operand.vmem [shape: f32[1,24], index: 8, kind: input, shape index: {}]   ;;  %s578_s9 = inlined_call_operand.vmem [shape: f32[2], index: 9, kind: input, shape index: {}]   ;;  %s579_s10 = inlined_call_operand.vmem [shape: f32[8,1], index: 10, kind: output, shape index: {}]  }
   0x1   :  { %s40_s15 = sshll.u32 %s578_s9, 4  ;;  %s41_s15 = int_to_ptr.vmem [resolvable:$true] %s40_s15 }
   0x2   :  { %s433_s16 = scalar_lea.vmem %s41_s15, 16  ;;  %p438_p1 = scmp.lt.s32.totalorder %s41_s15, %s41_s15 }
   0x3   :  { %p434_p0 = scmp.ne.s32.totalorder %s41_s15, %s433_s16  ;;  %p439_p2 = scmp.lt.s32.totalorder %s433_s16, %s433_s16 }
   0x5   :  { %p440_p3 = por %p439_p2, %p438_p1 }
   0x7   :  { %p441_p4 = pnand %p440_p3, %p434_p0 }
   0x9   :  { %444 = shalt.err (!%p441_p4)
}
   0xa   :  { %s447_s17 = smov [#allocation2]  }
   0xb   :  { %43 = dma.vmem_to_smem %s41_s15, 16, %s447_s17, [#allocation3]  }
   0xc   :  { %445 = dma.done.wait [#allocation3], 16  }
   0xd   :  { %446 = vsyncadd [#allocation3], 4294967280 }
   0xe   :  { %47 = sfence }
   0xf   :  { %v50_v0 = vld [vmem:[%s571_s2] sm:$0xff]  ;;  %v51_v1 = vld [vmem:[%s571_s2 + $0x8] sm:$0xff]  ;;  %v448_v2 = vmov 0.0|0.0   ;;  %vm449_vm0 = vmmov 0   ;;  %v450_v4 = vmov 0.0   ;;  %vm59_vm1 = vcmask 130048  }
  0x10   :  { %409 = vmatprep.subr.bf16.mxu0 %v448_v2  ;;  %v410_v3 = vpack.c.bf16 %v51_v1, %v50_v0  ;;  %384 = vmatprep.mubr.msk.f32.mxu0 %vm449_vm0, %v450_v4  ;;  %v134_v5 = vld [vmem:[%s573_s4] sm:$0xff]  ;;  %v135_v6 = vld [vmem:[%s573_s4 + $0x8] sm:$0xff]  ;;  %v136_v9 = vld [vmem:[%s573_s4 + $0x10] sm:$0xff]  ;;  %s451_s15 = smov 8   ;;  %vm145_vm2 = vcmask 261120   ;;  %vm224_vm3 = vcmask 64512  }
  0x11   :  { %412 = vmatprep.subr.bf16.mxu1 %v448_v2  ;;  %v413_v7 = vpack.c.bf16 %v135_v6, %v134_v5  ;;  %395 = vmatprep.mubr.msk.f32.mxu1 %vm449_vm0, %v450_v4  ;;  %v48_v8 = vld [vmem:[%s569_s0] sm:$0xff]  ;;  %v137_v10 = vld [vmem:[%s573_s4 + $0x18] sm:$0xff]  ;;  %v227_v14 = vld [vmem:[%s575_s6 + $0x8] sm:$0xff]  ;;  %vm334_vm4 = vcmask 195584   ;;  %s365_s22 = sld [smem:[#allocation2 + $0x1]]  ;;  %vm351_vm5 = vcmask 7168  }
  0x12   :  { %411 = vmatpush3.bf16.msra.mxu0 %v410_v3  ;;  %v416_v11 = vpack.c.bf16 %v137_v10, %v136_v9  ;;  %v49_v12 = vld [vmem:[%s570_s1] sm:$0xff]  ;;  %v228_v21 = vld [vmem:[%s575_s6 + $0x10] sm:$0xff]  ;;  %v229_v22 = vld [vmem:[%s575_s6 + $0x18] sm:$0xff] }
  0x13   :  { %414 = vmatpush3.bf16.msra.mxu1 %v413_v7  ;;  %418 = vmatprep.subr.bf16.mxu0 %v448_v2  ;;  %v226_v13 = vld [vmem:[%s575_s6] sm:$0xff]  ;;  %v422_v23 = vpack.c.bf16 %v229_v22, %v228_v21 }
  0x14   :  { %415 = vmatprep.subr.bf16.mxu1 %v448_v2  ;;  %221 = vrot.lane.b32.xlu0 %v49_v12, %s451_s15  ;;  %v419_v15 = vpack.c.bf16 %v227_v14, %v226_v13  ;;  %v358_v16 = vld [vmem:[%s572_s3] ss:$0 sm:$0xff] }
  0x15   :  { %385 = vmatmul.mubr.msk.f32.vlgmr.msra.gmra.mrb[0].mxu0 %vm59_vm1, %v48_v8  ;;  %v360_v24 = vld [vmem:[%s574_s5] ss:$0 sm:$0xff] }
  0x16   :  { %406 = vmatprep.mubr.msk.f32.mxu0 %vm449_vm0, %v450_v4  ;;  %420 = vmatpush3.bf16.msra.mxu0 %v419_v15  ;;  %v362_v34 = vld [vmem:[%s576_s7] ss:$0 sm:$0xff]  ;;  %s338_s7 = sld [smem:[#allocation2]] }
  0x17   :  { %417 = vmatpush3.bf16.msra.mxu1 %v416_v11  ;;  %421 = vmatprep.subr.bf16.mxu0 %v448_v2  ;;  %v364_v39 = vld [vmem:[%s577_s8] ss:$0 sm:$0xff]  ;;  %v343_v51 = vstv %s365_s22 }
  0x1a   :  { %423 = vmatpush3.bf16.msra.mxu0 %v422_v23 }
  0x1c   :  { %v339_v49 = vstv %s338_s7 }
  0x86   :  { %v222_v28 = vpop.permute.xlu0 %221 }
  0xe8   :  { %v129_v17 = vpop.f32.mrb[0].mxu0 }
  0xe9   :  { %v130_v18 = vadd.f32 %v358_v16, %v129_v17  ;;  %v386_v19 = vpop.f32.mrb[1].mxu0 }
  0xeb   :  { %v133_v20 = vmax.f32 %v130_v18, 0.0 }
  0xed   :  { %396 = vmatmul.mubr.msk.f32.vlgmr.msra.gmra.mrb[0].mxu1 %vm145_vm2, %v133_v20 }
 0x1c0   :  { %v215_v25 = vpop.f32.mrb[0].mxu1 }
 0x1c1   :  { %v216_v26 = vadd.f32 %v360_v24, %v215_v25  ;;  %v397_v27 = vpop.f32.mrb[1].mxu1 }
 0x1c3   :  { %v219_v29 = vmax.f32 %v216_v26, 0.0 }
 0x1c5   :  { %v225_v30 = vsel %vm224_vm3, %v219_v29, %v222_v28 }
 0x1c6   :  { %407 = vmatmul.mubr.msk.f32.vlgmr.msra.gmra.mrb[2].mxu0 %vm145_vm2, %v225_v30  ;;  %v311_v31 = vsel %vm145_vm2, %v225_v30, 0.0  ;;  %v314_v32 = vmul.f32 %v225_v30, %v225_v30 }
 0x1c7   :  { %312 = vadd.xlane.f32.xlu1 %v311_v31 }
 0x1c8   :  { %v315_v33 = vsel %vm145_vm2, %v314_v32, 0.0 }
 0x1cb   :  { %316 = vadd.xlane.f32.xlu1 %v315_v33 }
 0x254   :  { %v313_v44 = vpop.xlane.xlu1 %312 }
 0x255   :  { %v318_v46 = vmul.f32 %v313_v44, %v313_v44 }
 0x258   :  { %v317_v45 = vpop.xlane.xlu1 %316 }
 0x259   :  { %v319_v47 = vsub.f32 %v318_v46, %v317_v45 }
 0x25b   :  { %v320_v48 = vmul.f32 0.5, %v319_v47 }
 0x25d   :  { %v340_v50 = vmul.f32 %v339_v49, %v320_v48 }
 0x299   :  { %v306_v35 = vpop.f32.mrb[2].mxu0 }
 0x29a   :  { %v307_v36 = vadd.f32 %v362_v34, %v306_v35  ;;  %v408_v37 = vpop.f32.mrb[3].mxu0 }
 0x29c   :  { %v310_v38 = vmax.f32 %v307_v36, 0.0 }
 0x29e   :  { %322 = vrot.lane.b32.xlu0 %v310_v38, %s451_s15 }
 0x310   :  { %v323_v40 = vpop.permute.xlu0 %322 }
 0x311   :  { %v325_v41 = vsel %vm224_vm3, %v219_v29, %v323_v40 }
 0x312   :  { %v333_v42 = vmul.f32 %v364_v39, %v325_v41 }
 0x314   :  { %v335_v43 = vsel %vm334_vm4, %v333_v42, 0.0 }
 0x315   :  { %336 = vadd.xlane.f32.xlu0 %v335_v43 }
 0x3a2   :  { %v337_v52 = vpop.xlane.xlu0 %336 }
 0x3a3   :  { %v341_v53 = vadd.f32 %v340_v50, %v337_v52 }
 0x3a5   :  { %v344_v54 = vadd.f32 %v343_v51, %v341_v53 }
 0x3a7   :  { %v366_v55 = vmul.f32 -1.442695, %v344_v54 }
 0x3a9   :  { %429 = vpow2.f32 %v366_v55 }
 0x3b3   :  { %v430_v56 = vpop.eup %429 }
 0x3b4   :  { %v348_v57 = vadd.f32 1.0, %v430_v56 }
 0x3b6   :  { %431 = vrcp.f32 %v348_v57 }
 0x3c0   :  { %v432_v58 = vpop.eup %431 }
 0x3c1   :  { %352 = vst.msk [vmem:[%s579_s10] sm:$0xff] %vm351_vm5, %v432_v58 }
 0x3c2   :  { %357 = vsyncpa [#allocation3], 1 }

</bundles_post_ra>
